<compile_context>
chip_gen: v7x
topology: tpu7x:2x2x1
jax: 0.10.0
libtpu: 0.0.40
codegen_flags: <defaults>
</compile_context>

<pallas_src>
import jax
import jax.numpy as jnp
import numpy as np
from jax.experimental import pallas as pl
from jax.experimental.pallas import tpu as pltpu

INPUT_STEPS = 8       # `input_steps` global used inside ARModel.forward
FUTURE_STEPS = 10     # `future_steps` global
PACK = 128 // INPUT_STEPS          # 16 batch rows packed per 128-lane row
PACKED_IN = PACK * INPUT_STEPS     # 128
PACKED_OUT = PACK * FUTURE_STEPS   # 160


def _round_up(n, m):
    return (n + m - 1) // m * m


def ar_kernel(x_ref, w_ref, b_ref, out_ref):
    # x_ref:   (TB, 128)   packed inputs (16 batch rows per packed row)
    # w_ref:   (128, 160)  kron(I_16, W), pinned in VMEM across the grid
    # b_ref:   (1, 160)    tiled bias, pinned
    # out_ref: (TB, 160)   packed outputs
    out_ref[...] = (
        jnp.dot(x_ref[...], w_ref[...], preferred_element_type=jnp.float32)
        + b_ref[...]
    )


def ar_forward(x, w, b, *, max_packed_rows_per_tile=512):
    """ARModel forward.

    x: (B, S, 1) float32, S >= INPUT_STEPS
    w: (INPUT_STEPS, FUTURE_STEPS) float32  -- NOTE: pre-transposed relative to
       torch nn.Linear.weight (which is (out, in)); pass weight.T.
    b: (1, FUTURE_STEPS) or (FUTURE_STEPS,) float32
    returns: (B, FUTURE_STEPS) float32
    """
    B, S = x.shape[0], x.shape[1]
    assert S >= INPUT_STEPS, f"sequence length {S} < input_steps {INPUT_STEPS}"
    assert w.shape == (INPUT_STEPS, FUTURE_STEPS), (
        f"w must be (in, out) = ({INPUT_STEPS}, {FUTURE_STEPS}), got {w.shape}; "
        "pass torch nn.Linear.weight transposed")
    b = b.reshape(1, FUTURE_STEPS)

    # x[:, -input_steps:].squeeze(-1): only the consumed slab is DMA'd.
    x_in = x[:, -INPUT_STEPS:, 0]                       # (B, 8)

    # Pack 16 batch rows per 128-lane row (contiguous reshape -> free).
    Bp = _round_up(B, PACK)
    if Bp != B:                                         # <= 15 pad rows only
        x_in = jnp.pad(x_in, ((0, Bp - B), (0, 0)))
    R = Bp // PACK
    x_packed = x_in.reshape(R, PACKED_IN)               # (R, 128)

    # Block-diagonal expansion so the packed matmul computes per-row x @ W.
    w_big = jnp.kron(jnp.eye(PACK, dtype=w.dtype), w)   # (128, 160)
    b_big = jnp.tile(b, (1, PACK))                      # (1, 160)

    # Tile size in packed rows: as large as useful, multiple of 8 sublanes,
    # and >= 2 grid steps whenever possible so v7x's two TCs both work.
    if R <= 8:
        tb = R                                          # single full block
    else:
        tb = min(max_packed_rows_per_tile, _round_up(pl.cdiv(R, 2), 8))
    grid = (pl.cdiv(R, tb),)

    out_packed = pl.pallas_call(
        ar_kernel,
        out_shape=jax.ShapeDtypeStruct((R, PACKED_OUT), jnp.float32),
        grid=grid,
        in_specs=[
            pl.BlockSpec((tb, PACKED_IN), lambda i: (i, 0)),          # x tile
            pl.BlockSpec((PACKED_IN, PACKED_OUT), lambda i: (0, 0)),  # W pinned
            pl.BlockSpec((1, PACKED_OUT), lambda i: (0, 0)),          # b pinned
        ],
        out_specs=pl.BlockSpec((tb, PACKED_OUT), lambda i: (i, 0)),
        compiler_params=pltpu.CompilerParams(
            dimension_semantics=("parallel",),
        ),
    )(x_packed, w_big, b_big)

    # (R, 160) -> (Bp, 10) is a free contiguous reshape; drop pad rows.
    return out_packed.reshape(Bp, FUTURE_STEPS)[:B]


def reference_forward(x, w, b):
    """Pure-JAX reference with identical math (for validation)."""
    return x[:, -INPUT_STEPS:, 0] @ w + b.reshape(1, FUTURE_STEPS)


if __name__ == "__main__":
    key = jax.random.PRNGKey(0)
    k_x, k_w, k_b = jax.random.split(key, 3)

    B, S = 2, 16  # sequence longer than INPUT_STEPS to exercise the slice
    x = jax.random.normal(k_x, (B, S, 1), dtype=jnp.float32)

    # nn.Linear(INPUT_STEPS, FUTURE_STEPS): stored here pre-transposed as
    # (in, out) so the kernel does x @ W + b directly.
    w = (0.1 * jax.random.normal(k_w, (INPUT_STEPS, FUTURE_STEPS))).astype(jnp.float32)
    b = (0.1 * jax.random.normal(k_b, (1, FUTURE_STEPS))).astype(jnp.float32)

    out = jax.block_until_ready(ar_forward(x, w, b))
    ref = jax.block_until_ready(reference_forward(x, w, b))

    assert out.shape == (B, FUTURE_STEPS)
    np.testing.assert_allclose(np.asarray(out), np.asarray(ref),
                               rtol=1e-5, atol=1e-5)

    # Also exercise a larger, non-tile-divisible batch to hit the multi-step
    # grid / boundary-masking path.
    B2 = 1000
    x2 = jax.random.normal(k_x, (B2, S, 1), dtype=jnp.float32)
    out2 = jax.block_until_ready(ar_forward(x2, w, b, max_packed_rows_per_tile=16))
    ref2 = jax.block_until_ready(reference_forward(x2, w, b))
    np.testing.assert_allclose(np.asarray(out2), np.asarray(ref2),
                               rtol=1e-5, atol=1e-5)

    print("KERNEL_OK")
</pallas_src>

<mosaic_0001>
module attributes {stable_mosaic.version = 11 : i64} {
  func.func @ar_kernel(%arg0: i32, %arg1: memref<1x128xf32, #tpu.memory_space<vmem>>, %arg2: memref<128x160xf32, #tpu.memory_space<vmem>>, %arg3: memref<1x160xf32, #tpu.memory_space<vmem>>, %arg4: memref<1x160xf32, #tpu.memory_space<vmem>>) attributes {dimension_semantics = [#tpu.dimension_semantics<parallel>], iteration_bounds = array<i64: 1>, scalar_prefetch = 0 : i64, scratch_operands = 0 : i64, tpu.core_type = #tpu.core_type<tc>, window_params = [{transform_indices = @transform_0, window_bounds = array<i64: 1, 128>}, {pipeline_mode = #tpu.pipeline_mode<synchronous>, transform_indices = @transform_1, window_bounds = array<i64: 128, 160>}, {pipeline_mode = #tpu.pipeline_mode<synchronous>, transform_indices = @transform_2, window_bounds = array<i64: 1, 160>}, {transform_indices = @transform_3, window_bounds = array<i64: 1, 160>}]} {
    %c0 = arith.constant 0 : index
    %c0_0 = arith.constant 0 : index
    %0 = vector.load %arg1[%c0, %c0_0] : memref<1x128xf32, #tpu.memory_space<vmem>>, vector<1x128xf32>
    %c0_1 = arith.constant 0 : index
    %c0_2 = arith.constant 0 : index
    %1 = vector.load %arg2[%c0_1, %c0_2] : memref<128x160xf32, #tpu.memory_space<vmem>>, vector<128x160xf32>
    %cst = arith.constant dense<0.000000e+00> : vector<1x160xf32>
    %2 = tpu.matmul %0, %1, %cst {dimension_numbers = #tpu.dot_dimension_numbers<[1], [0], [0], [1], [0, 0, 1, 1], [], []>} : vector<1x128xf32>, vector<128x160xf32>, vector<1x160xf32> -> vector<1x160xf32>
    %c0_3 = arith.constant 0 : index
    %c0_4 = arith.constant 0 : index
    %3 = vector.load %arg3[%c0_3, %c0_4] : memref<1x160xf32, #tpu.memory_space<vmem>>, vector<1x160xf32>
    %4 = arith.addf %2, %3 : vector<1x160xf32>
    %c0_5 = arith.constant 0 : index
    %c0_6 = arith.constant 0 : index
    %5 = vector.load %arg4[%c0_5, %c0_6] : memref<1x160xf32, #tpu.memory_space<vmem>>, vector<1x160xf32>
    tpu.vector_store %arg4[%c0_5, %c0_6], %4 {strides = array<i32>} : memref<1x160xf32, #tpu.memory_space<vmem>>, vector<1x160xf32>,
    return
  }
  func.func @transform_0(%arg0: i32) -> (i32, i32) {
    %c0_i32 = arith.constant 0 : i32
    %c0_i32_0 = arith.constant 0 : i32
    return %arg0, %c0_i32 : i32, i32
  }
  func.func @transform_1(%arg0: i32) -> (i32, i32) {
    %c0_i32 = arith.constant 0 : i32
    %c0_i32_0 = arith.constant 0 : i32
    %c0_i32_1 = arith.constant 0 : i32
    return %c0_i32, %c0_i32_0 : i32, i32
  }
  func.func @transform_2(%arg0: i32) -> (i32, i32) {
    %c0_i32 = arith.constant 0 : i32
    %c0_i32_0 = arith.constant 0 : i32
    %c0_i32_1 = arith.constant 0 : i32
    return %c0_i32, %c0_i32_0 : i32, i32
  }
  func.func @transform_3(%arg0: i32) -> (i32, i32) {
    %c0_i32 = arith.constant 0 : i32
    %c0_i32_0 = arith.constant 0 : i32
    return %arg0, %c0_i32 : i32, i32
  }
}

</mosaic_0001>

<bundles_post_ra>
// kernel: tpu_custom_call.1
= control target key start
LH: loop header
LB: loop body
LE: loop exit
PB: predicated region body
PF: predicated region fallthrough
CT: control target
= control target key end

     0   :  { %v227_v7 = vmov 0.0   ;;  %s364_s0 = inlined_call_operand.vmem [shape: f32[1,128], index: 0, kind: input, shape index: {}]   ;;  %s365_s1 = inlined_call_operand.vmem [shape: f32[128,160], index: 1, kind: input, shape index: {}]   ;;  %s366_s2 = inlined_call_operand.vmem [shape: f32[1,160], index: 2, kind: input, shape index: {}]   ;;  %s367_s3 = inlined_call_operand.hbm [shape: f32[1,160], index: 3, kind: output, shape index: {}]  }
   0x1   :  { %v17_v0 = vld [vmem:[%s365_s1 + $0x8] sm:$0xff]  ;;  %v19_v1 = vld [vmem:[%s365_s1 + $0x18] sm:$0xff]  ;;  %v16_v2 = vld [vmem:[%s365_s1] sm:$0xff]  ;;  %124 = vmatprep.mubr.f32.mxu0 %v227_v7 }
   0x2   :  { %v168_v3 = vpack.c.bf16 %v19_v1, %v17_v0  ;;  %v18_v4 = vld [vmem:[%s365_s1 + $0x10] sm:$0xff]  ;;  %v21_v5 = vld [vmem:[%s365_s1 + $0x28] sm:$0xff]  ;;  %v23_v6 = vld [vmem:[%s365_s1 + $0x38] sm:$0xff] }
   0x3   :  { %v170_v8 = vpack.c.bf16 %v18_v4, %v16_v2  ;;  %v172_v9 = vpack.c.bf16 %v23_v6, %v21_v5  ;;  %v20_v10 = vld [vmem:[%s365_s1 + $0x20] sm:$0xff]  ;;  %v22_v11 = vld [vmem:[%s365_s1 + $0x30] sm:$0xff]  ;;  %v25_v12 = vld [vmem:[%s365_s1 + $0x48] sm:$0xff] }
   0x4   :  { %169 = vmatprep.subr.bf16.mxu0 %v168_v3  ;;  %v27_v13 = vld [vmem:[%s365_s1 + $0x58] sm:$0xff]  ;;  %v174_v14 = vpack.c.bf16 %v22_v11, %v20_v10  ;;  %v24_v16 = vld [vmem:[%s365_s1 + $0x40] sm:$0xff]  ;;  %v26_v17 = vld [vmem:[%s365_s1 + $0x50] sm:$0xff] }
   0x5   :  { %171 = vmatpush1.bf16.msra.mxu0 %v170_v8  ;;  %v176_v15 = vpack.c.bf16 %v27_v13, %v25_v12  ;;  %v29_v18 = vld [vmem:[%s365_s1 + $0x68] sm:$0xff]  ;;  %v31_v19 = vld [vmem:[%s365_s1 + $0x78] sm:$0xff]  ;;  %v178_v20 = vpack.c.bf16 %v26_v17, %v24_v16  ;;  %v28_v22 = vld [vmem:[%s365_s1 + $0x60] sm:$0xff] }
   0x6   :  { %173 = vmatprep.subr.bf16.mxu0 %v172_v9  ;;  %v180_v21 = vpack.c.bf16 %v31_v19, %v29_v18  ;;  %v30_v23 = vld [vmem:[%s365_s1 + $0x70] sm:$0xff]  ;;  %v33_v24 = vld [vmem:[%s365_s1 + $0x88] sm:$0xff]  ;;  %v35_v25 = vld [vmem:[%s365_s1 + $0x98] sm:$0xff] }
   0x9   :  { %175 = vmatpush1.bf16.msra.mxu0 %v174_v14 }
   0xa   :  { %177 = vmatprep.subr.bf16.mxu0 %v176_v15 }
   0xb   :  { %8 = vsyncpa [#allocation3], 0  ;;  %v182_v26 = vpack.c.bf16 %v30_v23, %v28_v22  ;;  %v184_v27 = vpack.c.bf16 %v35_v25, %v33_v24  ;;  %v32_v28 = vld [vmem:[%s365_s1 + $0x80] sm:$0xff]  ;;  %v34_v29 = vld [vmem:[%s365_s1 + $0x90] sm:$0xff]  ;;  %v50_v50 = vlaneseq  ;;  %v228_v55 = vmov 1966171168  }
   0xc   :  { %v37_v30 = vld [vmem:[%s365_s1 + $0xa8] sm:$0xff]  ;;  %v39_v31 = vld [vmem:[%s365_s1 + $0xb8] sm:$0xff]  ;;  %v186_v32 = vpack.c.bf16 %v34_v29, %v32_v28  ;;  %v36_v34 = vld [vmem:[%s365_s1 + $0xa0] sm:$0xff]  ;;  %v135_v56 = vunpack.c.l.s4 %v228_v55 }
   0xd   :  { %179 = vmatpush1.bf16.msra.mxu0 %v178_v20  ;;  %v188_v33 = vpack.c.bf16 %v39_v31, %v37_v30  ;;  %v38_v35 = vld [vmem:[%s365_s1 + $0xb0] sm:$0xff]  ;;  %v41_v36 = vld [vmem:[%s365_s1 + $0xc8] sm:$0xff]  ;;  %v43_v37 = vld [vmem:[%s365_s1 + $0xd8] sm:$0xff]  ;;  %v51_v51 = vshrl.u32 %v50_v50, 7  ;;  %vm151_vm0 = vcmp.lt.s32.totalorder %v50_v50, 160 }
   0xe   :  { %181 = vmatprep.subr.bf16.mxu0 %v180_v21  ;;  %v190_v38 = vpack.c.bf16 %v38_v35, %v36_v34  ;;  %v192_v39 = vpack.c.bf16 %v43_v37, %v41_v36  ;;  %v40_v40 = vld [vmem:[%s365_s1 + $0xc0] sm:$0xff]  ;;  %v42_v41 = vld [vmem:[%s365_s1 + $0xd0] sm:$0xff]  ;;  %v45_v42 = vld [vmem:[%s365_s1 + $0xe8] sm:$0xff]  ;;  %v136_v59 = vunpack.c.0.s8 %v135_v56 }
   0xf   :  { %v47_v43 = vld [vmem:[%s365_s1 + $0xf8] sm:$0xff]  ;;  %v194_v44 = vpack.c.bf16 %v42_v41, %v40_v40  ;;  %v44_v46 = vld [vmem:[%s365_s1 + $0xe0] sm:$0xff]  ;;  %v46_v47 = vld [vmem:[%s365_s1 + $0xf0] sm:$0xff]  ;;  %v52_v52 = vsub.s32 0, %v51_v51  ;;  %v56_v54 = vsub.s32 1, %v51_v51 }
  0x10   :  { %v196_v45 = vpack.c.bf16 %v47_v43, %v45_v42  ;;  %v198_v48 = vpack.c.bf16 %v46_v47, %v44_v46  ;;  %v15_v49 = vld [vmem:[%s364_s0] sm:$0x1]  ;;  %v139_v0 = vsub.s32 %v136_v59, %v51_v51  ;;  %s229_s0 = smov [#allocation2]  }
  0x11   :  { %183 = vmatpush1.bf16.msra.mxu0 %v182_v26  ;;  %v48_v53 = vld [vmem:[%s366_s2] sm:$0x3]  ;;  %s160_s1 = sshll.u32 %s229_s0, 4  ;;  %s161_s1 = int_to_ptr.vmem [resolvable:$true] %s160_s1 }
  0x12   :  { %185 = vmatprep.subr.bf16.mxu0 %v184_v27  ;;  %v53_v57 = vrot.slane %v48_v53, %v52_v52  ;;  %v57_v58 = vrot.slane %v48_v53, %v56_v54  ;;  %s203_s2 = scalar_lea.vmem %s161_s1, 32  ;;  %p208_p1 = scmp.lt.s32.totalorder %s161_s1, %s161_s1 }
  0x13   :  { %p204_p0 = scmp.ne.s32.totalorder %s161_s1, %s203_s2  ;;  %p209_p2 = scmp.lt.s32.totalorder %s203_s2, %s203_s2 }
  0x15   :  { %187 = vmatpush1.bf16.msra.mxu0 %v186_v32  ;;  %p210_p3 = por %p209_p2, %p208_p1 }
  0x16   :  { %189 = vmatprep.subr.bf16.mxu0 %v188_v33 }
  0x17   :  { %p211_p4 = pnand %p210_p3, %p204_p0 }
  0x19   :  { %191 = vmatpush1.bf16.msra.mxu0 %v190_v38 }
  0x1a   :  { %193 = vmatprep.subr.bf16.mxu0 %v192_v39 }
  0x1d   :  { %195 = vmatpush1.bf16.msra.mxu0 %v194_v44 }
  0x1e   :  { %197 = vmatprep.subr.bf16.mxu0 %v196_v45 }
  0x21   :  { %199 = vmatpush1.bf16.msra.mxu0 %v198_v48 }
  0x24   :  { %125 = vmatmul.mubr.f32.vlgmr.msra.gmra.mrb[0].mxu0 %v15_v49 }
  0xf7   :  { %v126_v60 = vpop.f32.mrb[0].mxu0 }
  0xf8   :  { %v127_v61 = vadd.f32 %v126_v60, %v53_v57  ;;  %v128_v62 = vpop.f32.mrb[1].mxu0 }
  0xf9   :  { %v129_v63 = vadd.f32 %v128_v62, %v57_v58 }
  0xfb   :  { %v133_v1 = vcombine.low %v127_v61, %v129_v63 }
  0xfd   :  { %v140_v2 = vrot.slane %v133_v1, %v139_v0 }
  0xff   :  { %v147_v3 = vrot.slane %v140_v2, %v139_v0 }
 0x101   :  { %153 = vst.msk [vmem:[#allocation2] sm:$0x3] %vm151_vm0, %v147_v3 }
 0x102   :  { %214 = shalt.err (!%p211_p4)
}
 0x103   :  { %s215_s28 = scalar_lea.hbm %s367_s3, 32 }
 0x104   :  { %p216_p5 = scmp.ne.s32.totalorder %s367_s3, %s215_s28  ;;  %p219_p6 = scmp.lt.u32.totalorder %s215_s28, %s367_s3 }
 0x106   :  { %p221_p7 = pnand %p219_p6, %p216_p5 }
 0x108   :  { %224 = shalt.err (!%p221_p7)
}
 0x109   :  { %163 = dma.vmem_to_hbm [thread:$0]  %s161_s1, 32, %s367_s3, [#allocation3]  }
 0x10a   :  { %225 = dma.done.wait [#allocation3], 32  }
 0x10b   :  { %226 = vsyncadd [#allocation3], 4294967264 }
 0x10c   :  { %167 = vsyncpa [#allocation3], 1 }

</bundles_post_ra>
